<compile_context>
chip_gen: v7x
topology: tpu7x:2x2x1
jax: 0.10.0
libtpu: 0.0.40
codegen_flags: <defaults>
</compile_context>

<pallas_src>
import functools

import jax
import jax.numpy as jnp
from jax.experimental import pallas as pl
from jax.experimental.pallas import tpu as pltpu

INPUT_SIZE = 102          # logical feature width (PyTorch module)
HIDDEN = 64
EMBED = 16
HEADS = 2 * EMBED         # fused (encoder @ [mean|logvar]) head width
LEAKY_SLOPE = 0.01        # PyTorch nn.LeakyReLU default negative_slope

DEFAULT_TILE_B = 4096     # rows per grid step (multiple of 16)
VMEM_LIMIT_BYTES = 48 * 1024 * 1024   # explicit scoped-VMEM limit (v5e-safe)


def _round_up(n, m):
    return ((n + m - 1) // m) * m


def _vae_kernel(
    x_ref,                        # (TB, 102) f32   streamed batch tile
    w_fold_ref, b_fold_ref,       # (102, 32) bf16, (1, 32) f32   encoder∘heads fold
    w_d1_ref, b_d1_ref,           # (16, 64) bf16,  (1, 64) f32
    w_d2_ref, b_d2_ref,           # (64, 102) bf16, (1, 102) f32
    eps_ref,                      # (TB, 16) f32
    recon_ref,                    # (TB, 102) f32
    mean_ref,                     # (TB, 16) f32
    logvar_ref,                   # (TB, 16) f32
):
    bf16 = jnp.bfloat16
    x = x_ref[...].astype(bf16)                       # in-register cast, no HBM cost

    # Folded encoder + mean|logvar heads: x(102) @ W_fold(102,32)  (f32 MXU acc).
    ml = jnp.dot(x, w_fold_ref[...],
                 preferred_element_type=jnp.float32) + b_fold_ref[...]
    mean = ml[:, :EMBED]
    logvar = ml[:, EMBED:]

    # Reparameterize (f32 elementwise): z = mean + eps * exp(0.5 * logvar).
    z = mean + eps_ref[...] * jnp.exp(0.5 * logvar)

    # Decoder: Linear(16, 64) -> LeakyReLU -> Linear(64, 102).
    d1 = jnp.dot(z.astype(bf16), w_d1_ref[...],
                 preferred_element_type=jnp.float32) + b_d1_ref[...]
    a = jnp.where(d1 >= 0, d1, LEAKY_SLOPE * d1)
    recon = jnp.dot(a.astype(bf16), w_d2_ref[...],
                    preferred_element_type=jnp.float32) + b_d2_ref[...]

    recon_ref[...] = recon
    mean_ref[...] = mean
    logvar_ref[...] = logvar


@functools.partial(jax.jit, static_argnames=("tile_b_default",))
def preflop_vae_forward(x, packed, eps, *, tile_b_default=DEFAULT_TILE_B):
    """x: (B, 102) f32, eps: (B, 16) f32, packed: folded/cast params.

    Returns (recon (B, 102), mean (B, 16), logvar (B, 16)), all f32.
    """
    B = x.shape[0]

    # Tile selection: multiple of 16 rows, capped at ~ceil(B/2) so the grid
    # has >= 2 steps whenever possible (megacore sharding on v7x).
    half = _round_up(max(1, -(-B // 2)), 16)
    tile_b = max(16, min(tile_b_default, half))
    pb = _round_up(B, tile_b)

    x_f = x.astype(jnp.float32)
    eps_f = eps.astype(jnp.float32)
    if pb != B:
        x_f = jnp.pad(x_f, ((0, pb - B), (0, 0)))
        eps_f = jnp.pad(eps_f, ((0, pb - B), (0, 0)))
    num_tiles = pb // tile_b

    row_spec = lambda f: pl.BlockSpec((tile_b, f), lambda i: (i, 0))
    const_spec = lambda shp: pl.BlockSpec(shp, lambda i: (0, 0))

    args = (
        x_f,
        packed["w_fold"], packed["b_fold"],
        packed["w_d1"], packed["b_d1"],
        packed["w_d2"], packed["b_d2"],
        eps_f,
    )
    in_specs = [
        row_spec(INPUT_SIZE),
        const_spec((INPUT_SIZE, HEADS)), const_spec((1, HEADS)),
        const_spec((EMBED, HIDDEN)), const_spec((1, HIDDEN)),
        const_spec((HIDDEN, INPUT_SIZE)), const_spec((1, INPUT_SIZE)),
        row_spec(EMBED),
    ]
    out_specs = (row_spec(INPUT_SIZE), row_spec(EMBED), row_spec(EMBED))
    out_shapes = (
        jax.ShapeDtypeStruct((pb, INPUT_SIZE), jnp.float32),   # recon
        jax.ShapeDtypeStruct((pb, EMBED), jnp.float32),        # mean
        jax.ShapeDtypeStruct((pb, EMBED), jnp.float32),        # logvar
    )

    recon, mean, logvar = pl.pallas_call(
        _vae_kernel,
        out_shape=out_shapes,
        grid=(num_tiles,),
        in_specs=in_specs,
        out_specs=out_specs,
        compiler_params=pltpu.CompilerParams(
            dimension_semantics=("parallel",),
            vmem_limit_bytes=VMEM_LIMIT_BYTES),
    )(*args)

    if pb != B:
        recon, mean, logvar = recon[:B], mean[:B], logvar[:B]
    return recon, mean, logvar


def init_params(key):
    """Deterministic init mirroring the PyTorch module's parameter shapes.

    PyTorch stores Linear weights as (out, in); we keep (in, out) so the
    kernel computes x @ W directly.
    """
    keys = jax.random.split(key, 10)

    def linear(kw, kb, fan_in, fan_out):
        bound = 1.0 / jnp.sqrt(jnp.float32(fan_in))
        w = jax.random.uniform(kw, (fan_in, fan_out), jnp.float32, -bound, bound)
        b = jax.random.uniform(kb, (1, fan_out), jnp.float32, -bound, bound)
        return w, b

    w_enc, b_enc = linear(keys[0], keys[1], INPUT_SIZE, HIDDEN)
    w_mean, b_mean = linear(keys[2], keys[3], HIDDEN, EMBED)
    w_lv, b_lv = linear(keys[4], keys[5], HIDDEN, EMBED)
    w_d1, b_d1 = linear(keys[6], keys[7], EMBED, HIDDEN)
    w_d2, b_d2 = linear(keys[8], keys[9], HIDDEN, INPUT_SIZE)
    return dict(
        w_enc=w_enc, b_enc=b_enc,
        w_mean=w_mean, b_mean=b_mean,
        w_lv=w_lv, b_lv=b_lv,
        w_d1=w_d1, b_d1=b_d1,
        w_d2=w_d2, b_d2=b_d2,
    )


def pack_params(params):
    """Fold encoder∘heads into one weight, cast matmul weights to bf16.

    The fold W_fold = W_enc @ [W_mean | W_lv], b_fold = b_enc @ [W_mean | W_lv]
    + [b_mean | b_lv] is exact: the PyTorch module has no activation between
    the encoder Linear and the mean/logvar heads.
    """
    bf16 = jnp.bfloat16
    w_ml = jnp.concatenate([params["w_mean"], params["w_lv"]], axis=1)   # (64, 32)
    b_ml = jnp.concatenate([params["b_mean"], params["b_lv"]], axis=1)   # (1, 32)
    w_fold = params["w_enc"] @ w_ml                                      # (102, 32)
    b_fold = params["b_enc"] @ w_ml + b_ml                               # (1, 32)
    return dict(
        w_fold=w_fold.astype(bf16), b_fold=b_fold.astype(jnp.float32),
        w_d1=params["w_d1"].astype(bf16), b_d1=params["b_d1"].astype(jnp.float32),
        w_d2=params["w_d2"].astype(bf16), b_d2=params["b_d2"].astype(jnp.float32),
    )


def reference_forward(x, packed, eps):
    """Pure-JAX reference mirroring the kernel's bf16-matmul / f32-elementwise flow."""
    f32, bf16 = jnp.float32, jnp.bfloat16
    xb = x.astype(bf16).astype(f32)
    ml = xb @ packed["w_fold"].astype(f32) + packed["b_fold"]
    mean, logvar = ml[:, :EMBED], ml[:, EMBED:]
    z = mean + eps * jnp.exp(0.5 * logvar)
    d1 = z.astype(bf16).astype(f32) @ packed["w_d1"].astype(f32) + packed["b_d1"]
    a = jnp.where(d1 >= 0, d1, LEAKY_SLOPE * d1)
    recon = a.astype(bf16).astype(f32) @ packed["w_d2"].astype(f32) + packed["b_d2"]
    return recon, mean, logvar


def reference_forward_f32(x, params, eps):
    """Full-f32, unfolded math exactly as the PyTorch module computes it."""
    h = x @ params["w_enc"] + params["b_enc"]
    mean = h @ params["w_mean"] + params["b_mean"]
    logvar = h @ params["w_lv"] + params["b_lv"]
    z = mean + eps * jnp.exp(0.5 * logvar)
    d1 = z @ params["w_d1"] + params["b_d1"]
    a = jnp.where(d1 >= 0, d1, LEAKY_SLOPE * d1)
    recon = a @ params["w_d2"] + params["b_d2"]
    return recon, mean, logvar


if __name__ == "__main__":
    key = jax.random.PRNGKey(0)
    k_params, k_x, k_eps, k_x2, k_eps2 = jax.random.split(key, 5)

    params = init_params(k_params)
    packed = pack_params(params)

    # Small single-tile batch (B=8 padded to one 16-row tile).
    B = 8
    x = jax.random.normal(k_x, (B, INPUT_SIZE), dtype=jnp.float32)
    eps = jax.random.normal(k_eps, (B, EMBED), dtype=jnp.float32)   # torch.randn_like

    recon, mean, logvar = preflop_vae_forward(x, packed, eps)
    jax.block_until_ready((recon, mean, logvar))

    r_ref, m_ref, lv_ref = reference_forward(x, packed, eps)
    assert recon.shape == (B, INPUT_SIZE)
    assert mean.shape == (B, EMBED) and logvar.shape == (B, EMBED)
    assert jnp.allclose(recon, r_ref, atol=2e-3, rtol=2e-3)
    assert jnp.allclose(mean, m_ref, atol=2e-3, rtol=2e-3)
    assert jnp.allclose(logvar, lv_ref, atol=2e-3, rtol=2e-3)

    # Loose sanity check vs the unfolded, full-f32 PyTorch math (semantics).
    r32, m32, lv32 = reference_forward_f32(x, params, eps)
    assert jnp.allclose(recon, r32, atol=5e-2, rtol=5e-2)
    assert jnp.allclose(mean, m32, atol=5e-2, rtol=5e-2)
    assert jnp.allclose(logvar, lv32, atol=5e-2, rtol=5e-2)

    # Multi-step grid: B=90 -> tile 48, padded to 96 rows, 2 grid steps
    # (exercises megacore-parallel batch sharding and row padding).
    B2 = 90
    x2 = jax.random.normal(k_x2, (B2, INPUT_SIZE), dtype=jnp.float32)
    eps2 = jax.random.normal(k_eps2, (B2, EMBED), dtype=jnp.float32)
    recon2, mean2, logvar2 = preflop_vae_forward(x2, packed, eps2)
    jax.block_until_ready((recon2, mean2, logvar2))
    r2, m2, lv2 = reference_forward(x2, packed, eps2)
    assert recon2.shape == (B2, INPUT_SIZE)
    assert jnp.allclose(recon2, r2, atol=2e-3, rtol=2e-3)
    assert jnp.allclose(mean2, m2, atol=2e-3, rtol=2e-3)
    assert jnp.allclose(logvar2, lv2, atol=2e-3, rtol=2e-3)

    print("KERNEL_OK")
</pallas_src>

<mosaic_0001>
module attributes {stable_mosaic.version = 11 : i64} {
  func.func @_vae_kernel(%arg0: i32, %arg1: memref<16x102xf32, #tpu.memory_space<vmem>>, %arg2: memref<102x32xbf16, #tpu.memory_space<vmem>>, %arg3: memref<1x32xf32, #tpu.memory_space<vmem>>, %arg4: memref<16x64xbf16, #tpu.memory_space<vmem>>, %arg5: memref<1x64xf32, #tpu.memory_space<vmem>>, %arg6: memref<64x102xbf16, #tpu.memory_space<vmem>>, %arg7: memref<1x102xf32, #tpu.memory_space<vmem>>, %arg8: memref<16x16xf32, #tpu.memory_space<vmem>>, %arg9: memref<16x102xf32, #tpu.memory_space<vmem>>, %arg10: memref<16x16xf32, #tpu.memory_space<vmem>>, %arg11: memref<16x16xf32, #tpu.memory_space<vmem>>) attributes {dimension_semantics = [#tpu.dimension_semantics<parallel>], iteration_bounds = array<i64: 1>, scalar_prefetch = 0 : i64, scratch_operands = 0 : i64, tpu.core_type = #tpu.core_type<tc>, window_params = [{transform_indices = @transform_0, window_bounds = array<i64: 16, 102>}, {pipeline_mode = #tpu.pipeline_mode<synchronous>, transform_indices = @transform_1, window_bounds = array<i64: 102, 32>}, {pipeline_mode = #tpu.pipeline_mode<synchronous>, transform_indices = @transform_2, window_bounds = array<i64: 1, 32>}, {pipeline_mode = #tpu.pipeline_mode<synchronous>, transform_indices = @transform_3, window_bounds = array<i64: 16, 64>}, {pipeline_mode = #tpu.pipeline_mode<synchronous>, transform_indices = @transform_4, window_bounds = array<i64: 1, 64>}, {pipeline_mode = #tpu.pipeline_mode<synchronous>, transform_indices = @transform_5, window_bounds = array<i64: 64, 102>}, {pipeline_mode = #tpu.pipeline_mode<synchronous>, transform_indices = @transform_6, window_bounds = array<i64: 1, 102>}, {transform_indices = @transform_7, window_bounds = array<i64: 16, 16>}, {transform_indices = @transform_8, window_bounds = array<i64: 16, 102>}, {transform_indices = @transform_9, window_bounds = array<i64: 16, 16>}, {transform_indices = @transform_10, window_bounds = array<i64: 16, 16>}]} {
    %c0 = arith.constant 0 : index
    %c0_0 = arith.constant 0 : index
    %0 = vector.load %arg1[%c0, %c0_0] : memref<16x102xf32, #tpu.memory_space<vmem>>, vector<16x102xf32>
    %1 = arith.truncf %0 : vector<16x102xf32> to vector<16x102xbf16>
    %c0_1 = arith.constant 0 : index
    %c0_2 = arith.constant 0 : index
    %2 = vector.load %arg2[%c0_1, %c0_2] : memref<102x32xbf16, #tpu.memory_space<vmem>>, vector<102x32xbf16>
    %cst = arith.constant dense<0.000000e+00> : vector<16x32xf32>
    %3 = tpu.matmul %1, %2, %cst {dimension_numbers = #tpu.dot_dimension_numbers<[1], [0], [0], [1], [0, 0, 1, 1], [], []>} : vector<16x102xbf16>, vector<102x32xbf16>, vector<16x32xf32> -> vector<16x32xf32>
    %c0_3 = arith.constant 0 : index
    %c0_4 = arith.constant 0 : index
    %4 = vector.load %arg3[%c0_3, %c0_4] : memref<1x32xf32, #tpu.memory_space<vmem>>, vector<1x32xf32>
    %5 = vector.broadcast %4 : vector<1x32xf32> to vector<16x32xf32>
    %6 = arith.addf %3, %5 : vector<16x32xf32>
    %7 = vector.extract_strided_slice %6 {offsets = [0, 0], sizes = [16, 16], strides = [1, 1]} : vector<16x32xf32> to vector<16x16xf32>
    %8 = vector.extract_strided_slice %6 {offsets = [0, 16], sizes = [16, 16], strides = [1, 1]} : vector<16x32xf32> to vector<16x16xf32>
    %c0_5 = arith.constant 0 : index
    %c0_6 = arith.constant 0 : index
    %9 = vector.load %arg8[%c0_5, %c0_6] : memref<16x16xf32, #tpu.memory_space<vmem>>, vector<16x16xf32>
    %cst_7 = arith.constant 5.000000e-01 : f32
    %10 = vector.broadcast %cst_7 : f32 to vector<16x16xf32>
    %11 = arith.mulf %10, %8 : vector<16x16xf32>
    %12 = math.exp %11 : vector<16x16xf32>
    %13 = arith.mulf %9, %12 : vector<16x16xf32>
    %14 = arith.addf %7, %13 : vector<16x16xf32>
    %15 = arith.truncf %14 : vector<16x16xf32> to vector<16x16xbf16>
    %c0_8 = arith.constant 0 : index
    %c0_9 = arith.constant 0 : index
    %16 = vector.load %arg4[%c0_8, %c0_9] : memref<16x64xbf16, #tpu.memory_space<vmem>>, vector<16x64xbf16>
    %cst_10 = arith.constant dense<0.000000e+00> : vector<16x64xf32>
    %17 = tpu.matmul %15, %16, %cst_10 {dimension_numbers = #tpu.dot_dimension_numbers<[1], [0], [0], [1], [0, 0, 1, 1], [], []>} : vector<16x16xbf16>, vector<16x64xbf16>, vector<16x64xf32> -> vector<16x64xf32>
    %c0_11 = arith.constant 0 : index
    %c0_12 = arith.constant 0 : index
    %18 = vector.load %arg5[%c0_11, %c0_12] : memref<1x64xf32, #tpu.memory_space<vmem>>, vector<1x64xf32>
    %19 = vector.broadcast %18 : vector<1x64xf32> to vector<16x64xf32>
    %20 = arith.addf %17, %19 : vector<16x64xf32>
    %cst_13 = arith.constant 0.000000e+00 : f32
    %21 = vector.broadcast %cst_13 : f32 to vector<16x64xf32>
    %22 = arith.cmpf oge, %20, %21 : vector<16x64xf32>
    %cst_14 = arith.constant 0.00999999977 : f32
    %23 = vector.broadcast %cst_14 : f32 to vector<16x64xf32>
    %24 = arith.mulf %23, %20 : vector<16x64xf32>
    %25 = arith.select %22, %20, %24 : vector<16x64xi1>, vector<16x64xf32>
    %26 = arith.truncf %25 : vector<16x64xf32> to vector<16x64xbf16>
    %c0_15 = arith.constant 0 : index
    %c0_16 = arith.constant 0 : index
    %27 = vector.load %arg6[%c0_15, %c0_16] : memref<64x102xbf16, #tpu.memory_space<vmem>>, vector<64x102xbf16>
    %cst_17 = arith.constant dense<0.000000e+00> : vector<16x102xf32>
    %28 = tpu.matmul %26, %27, %cst_17 {dimension_numbers = #tpu.dot_dimension_numbers<[1], [0], [0], [1], [0, 0, 1, 1], [], []>} : vector<16x64xbf16>, vector<64x102xbf16>, vector<16x102xf32> -> vector<16x102xf32>
    %c0_18 = arith.constant 0 : index
    %c0_19 = arith.constant 0 : index
    %29 = vector.load %arg7[%c0_18, %c0_19] : memref<1x102xf32, #tpu.memory_space<vmem>>, vector<1x102xf32>
    %30 = vector.broadcast %29 : vector<1x102xf32> to vector<16x102xf32>
    %31 = arith.addf %28, %30 : vector<16x102xf32>
    %c0_20 = arith.constant 0 : index
    %c0_21 = arith.constant 0 : index
    %32 = vector.load %arg9[%c0_20, %c0_21] : memref<16x102xf32, #tpu.memory_space<vmem>>, vector<16x102xf32>
    tpu.vector_store %arg9[%c0_20, %c0_21], %31 {strides = array<i32>} : memref<16x102xf32, #tpu.memory_space<vmem>>, vector<16x102xf32>,
    %c0_22 = arith.constant 0 : index
    %c0_23 = arith.constant 0 : index
    %33 = vector.load %arg10[%c0_22, %c0_23] : memref<16x16xf32, #tpu.memory_space<vmem>>, vector<16x16xf32>
    tpu.vector_store %arg10[%c0_22, %c0_23], %7 {strides = array<i32>} : memref<16x16xf32, #tpu.memory_space<vmem>>, vector<16x16xf32>,
    %c0_24 = arith.constant 0 : index
    %c0_25 = arith.constant 0 : index
    %34 = vector.load %arg11[%c0_24, %c0_25] : memref<16x16xf32, #tpu.memory_space<vmem>>, vector<16x16xf32>
    tpu.vector_store %arg11[%c0_24, %c0_25], %8 {strides = array<i32>} : memref<16x16xf32, #tpu.memory_space<vmem>>, vector<16x16xf32>,
    return
  }
  func.func @transform_0(%arg0: i32) -> (i32, i32) {
    %c0_i32 = arith.constant 0 : i32
    %c0_i32_0 = arith.constant 0 : i32
    return %arg0, %c0_i32 : i32, i32
  }
  func.func @transform_1(%arg0: i32) -> (i32, i32) {
    %c0_i32 = arith.constant 0 : i32
    %c0_i32_0 = arith.constant 0 : i32
    %c0_i32_1 = arith.constant 0 : i32
    return %c0_i32, %c0_i32_0 : i32, i32
  }
  func.func @transform_2(%arg0: i32) -> (i32, i32) {
    %c0_i32 = arith.constant 0 : i32
    %c0_i32_0 = arith.constant 0 : i32
    %c0_i32_1 = arith.constant 0 : i32
    return %c0_i32, %c0_i32_0 : i32, i32
  }
  func.func @transform_3(%arg0: i32) -> (i32, i32) {
    %c0_i32 = arith.constant 0 : i32
    %c0_i32_0 = arith.constant 0 : i32
    %c0_i32_1 = arith.constant 0 : i32
    return %c0_i32, %c0_i32_0 : i32, i32
  }
  func.func @transform_4(%arg0: i32) -> (i32, i32) {
    %c0_i32 = arith.constant 0 : i32
    %c0_i32_0 = arith.constant 0 : i32
    %c0_i32_1 = arith.constant 0 : i32
    return %c0_i32, %c0_i32_0 : i32, i32
  }
  func.func @transform_5(%arg0: i32) -> (i32, i32) {
    %c0_i32 = arith.constant 0 : i32
    %c0_i32_0 = arith.constant 0 : i32
    %c0_i32_1 = arith.constant 0 : i32
    return %c0_i32, %c0_i32_0 : i32, i32
  }
  func.func @transform_6(%arg0: i32) -> (i32, i32) {
    %c0_i32 = arith.constant 0 : i32
    %c0_i32_0 = arith.constant 0 : i32
    %c0_i32_1 = arith.constant 0 : i32
    return %c0_i32, %c0_i32_0 : i32, i32
  }
  func.func @transform_7(%arg0: i32) -> (i32, i32) {
    %c0_i32 = arith.constant 0 : i32
    %c0_i32_0 = arith.constant 0 : i32
    return %arg0, %c0_i32 : i32, i32
  }
  func.func @transform_8(%arg0: i32) -> (i32, i32) {
    %c0_i32 = arith.constant 0 : i32
    %c0_i32_0 = arith.constant 0 : i32
    return %arg0, %c0_i32 : i32, i32
  }
  func.func @transform_9(%arg0: i32) -> (i32, i32) {
    %c0_i32 = arith.constant 0 : i32
    %c0_i32_0 = arith.constant 0 : i32
    return %arg0, %c0_i32 : i32, i32
  }
  func.func @transform_10(%arg0: i32) -> (i32, i32) {
    %c0_i32 = arith.constant 0 : i32
    %c0_i32_0 = arith.constant 0 : i32
    return %arg0, %c0_i32 : i32, i32
  }
}

</mosaic_0001>

<bundles_post_ra>
// kernel: preflop_vae_forward.1
= control target key start
LH: loop header
LB: loop body
LE: loop exit
PB: predicated region body
PF: predicated region fallthrough
CT: control target
= control target key end

     0   :  { %v430_v0 = vmov 0.0   ;;  %vm431_vm0 = vmmov 0   ;;  %vm99_vm1 = vcmask 1042432   ;;  %vm95_vm2 = vcmask 834560   ;;  %s589_s1 = inlined_call_operand.vmem [shape: bf16[102,32], index: 1, kind: input, shape index: {}]   ;;  %s590_s0 = inlined_call_operand.vmem [shape: f32[16,102], index: 0, kind: input, shape index: {}]   ;;  %s591_s2 = inlined_call_operand.vmem [shape: f32[1,32], index: 2, kind: input, shape index: {}]   ;;  %s592_s9 = inlined_call_operand.vmem [shape: f32[16,16], index: 9, kind: output, shape index: {1}]   ;;  %s593_s3 = inlined_call_operand.vmem [shape: bf16[16,64], index: 3, kind: input, shape index: {}]   ;;  %s594_s5 = inlined_call_operand.vmem [shape: bf16[64,102], index: 5, kind: input, shape index: {}]   ;;  %s595_s10 = inlined_call_operand.vmem [shape: f32[16,16], index: 10, kind: output, shape index: {2}]   ;;  %s596_s7 = inlined_call_operand.vmem [shape: f32[16,16], index: 7, kind: input, shape index: {}]   ;;  %s597_s4 = inlined_call_operand.vmem [shape: f32[1,64], index: 4, kind: input, shape index: {}]   ;;  %s598_s6 = inlined_call_operand.vmem [shape: f32[1,102], index: 6, kind: input, shape index: {}]   ;;  %s599_s8 = inlined_call_operand.vmem [shape: f32[16,102], index: 8, kind: output, shape index: {0}]  }
   0x1   :  { %375 = vmatprep.subr.bf16.mxu0 %v430_v0  ;;  %v414_v1 = vld [vmem:[%s589_s1] sm:$0xff]   ;;  %389 = vmatprep.mubr.msk.bf16.mxu0 %vm431_vm0, %v430_v0  ;;  %v415_v2 = vld [vmem:[%s589_s1 + $0x8] sm:$0xff]   ;;  %v416_v3 = vld [vmem:[%s589_s1 + $0x10] sm:$0xff]   ;;  %vm180_vm3 = vcmask 130048   ;;  %vm271_vm6 = vcmask 523264  }
   0x2   :  { %393 = vmatprep.subr.bf16.mxu1 %v430_v0  ;;  %395 = vmatprep.mubr.msk.bf16.mxu1 %vm431_vm0, %v430_v0  ;;  %v417_v4 = vld [vmem:[%s589_s1 + $0x18] sm:$0xff]   ;;  %v418_v5 = vld [vmem:[%s589_s1 + $0x20] sm:$0xff]   ;;  %v419_v6 = vld [vmem:[%s589_s1 + $0x28] sm:$0xff]  }
   0x3   :  { %376 = vmatpush3.bf16.msra.mxu0 %v414_v1  ;;  %v420_v7 = vld [vmem:[%s589_s1 + $0x30] ss:$0 sps:$4 sm:$0x77]   ;;  %v33_v8 = vld [vmem:[%s590_s0] sm:$0xff]  ;;  %v34_v9 = vld [vmem:[%s590_s0 + $0x8] sm:$0xff]  ;;  %s432_s0 = smov 112  }
   0x4   :  { %377 = vmatprep.subr.bf16.mxu0 %v430_v0  ;;  %v101_v10 = vsel %vm99_vm1, %v420_v7, 0  ;;  %v35_v11 = vpack.c.bf16 %v34_v9, %v33_v8  ;;  %v342_v12 = vld [vmem:[%s591_s2] ss:$0 sm:$0xff]  ;;  %v145_v30 = vld [vmem:[%s596_s7 + $0x8] sm:$0xff]  ;;  %v424_v39 = vld [vmem:[%s594_s5 + $0x10] sm:$0xff]  }
   0x5   :  { %v421_v23 = vld [vmem:[%s593_s3] sm:$0xff]   ;;  %v423_v38 = vld [vmem:[%s594_s5 + $0x8] sm:$0xff]   ;;  %v425_v40 = vld [vmem:[%s594_s5 + $0x18] sm:$0xff]  }
   0x6   :  { %394 = vmatpush3.bf16.msra.mxu1 %v421_v23  ;;  %v144_v28 = vld [vmem:[%s596_s7] sm:$0xff] }
   0x7   :  { %378 = vmatpush3.bf16.msra.mxu0 %v415_v2  ;;  %399 = vmatprep.subr.bf16.mxu1 %v430_v0  ;;  %v422_v36 = vld [vmem:[%s594_s5] sm:$0xff]  }
   0x8   :  { %379 = vmatprep.subr.bf16.mxu0 %v430_v0  ;;  %v351_v41 = vld [vmem:[%s597_s4] ss:$0 sm:$0xff] }
   0x9   :  { %v354_v53 = vld [vmem:[%s598_s6] ss:$0 sm:$0xff] }
   0xb   :  { %380 = vmatpush3.bf16.msra.mxu0 %v416_v3 }
   0xc   :  { %381 = vmatprep.subr.bf16.mxu0 %v430_v0 }
   0xf   :  { %382 = vmatpush3.bf16.msra.mxu0 %v417_v4 }
  0x10   :  { %383 = vmatprep.subr.bf16.mxu0 %v430_v0 }
  0x13   :  { %384 = vmatpush3.bf16.msra.mxu0 %v418_v5 }
  0x14   :  { %385 = vmatprep.subr.bf16.mxu0 %v430_v0 }
  0x17   :  { %386 = vmatpush3.bf16.msra.mxu0 %v419_v6 }
  0x18   :  { %387 = vmatprep.subr.bf16.mxu0 %v430_v0 }
  0x1b   :  { %388 = vmatpush3.bf16.msra.mxu0 %v101_v10 }
  0x1e   :  { %390 = vmatmul.mubr.msk.bf16.vlgmr.msra.gmra.mrb[0].mxu0 %vm95_vm2, %v35_v11 }
  0xf1   :  { %v137_v13 = vpop.f32.mrb[0].mxu0 }
  0xf2   :  { %v138_v14 = vadd.f32 %v342_v12, %v137_v13  ;;  %v391_v15 = vpop.f32.mrb[1].mxu0 }
  0xf3   :  { %v140_v16 = vpop.f32.mrb[2].mxu0 }
  0xf4   :  { %v146_v17 = vmul.f32 0.5, %v138_v14  ;;  %v141_v18 = vadd.f32 %v342_v12, %v140_v16  ;;  %322 = vrot.lane.b32.xlu1 %v138_v14, %s432_s0  ;;  %v392_v19 = vpop.f32.mrb[3].mxu0  ;;  %318 = vst.msk [vmem:[%s592_s9] sm:$0xff] %vm180_vm3, %v138_v14 }
  0xf6   :  { %v148_v20 = vmul.f32 1.442695, %v146_v17  ;;  %v147_v21 = vmul.f32 0.5, %v141_v18  ;;  %319 = vst.msk [vmem:[%s592_s9 + $0x8] sm:$0xff] %vm180_vm3, %v141_v18 }
  0xf8   :  { %426 = vpow2.f32 %v148_v20  ;;  %v150_v22 = vmul.f32 1.442695, %v147_v21  ;;  %324 = vrot.lane.b32.xlu1 %v141_v18, %s432_s0 }
  0xfa   :  { %428 = vpow2.f32 %v150_v22 }
 0x102   :  { %v427_v24 = vpop.eup %426 }
 0x103   :  { %154 = vrot.lane.b32.xlu0 %v427_v24, %s432_s0 }
 0x104   :  { %v429_v25 = vpop.eup %428 }
 0x107   :  { %156 = vrot.lane.b32.xlu0 %v429_v25, %s432_s0 }
 0x166   :  { %v323_v26 = vpop.permute.xlu1 %322 }
 0x167   :  { %328 = vst.msk [vmem:[%s595_s10] sm:$0xff] %vm180_vm3, %v323_v26 }
 0x16a   :  { %v325_v27 = vpop.permute.xlu1 %324 }
 0x16b   :  { %329 = vst.msk [vmem:[%s595_s10 + $0x8] sm:$0xff] %vm180_vm3, %v325_v27 }
 0x175   :  { %v155_v29 = vpop.permute.xlu0 %154 }
 0x176   :  { %v160_v31 = vmul.f32 %v155_v29, %v144_v28 }
 0x178   :  { %v162_v34 = vadd.f32 %v160_v31, %v138_v14 }
 0x179   :  { %v157_v32 = vpop.permute.xlu0 %156 }
 0x17a   :  { %v161_v33 = vmul.f32 %v157_v32, %v145_v30 }
 0x17c   :  { %v163_v35 = vadd.f32 %v161_v33, %v141_v18 }
 0x17e   :  { %v164_v37 = vpack.c.bf16 %v163_v35, %v162_v34 }
 0x180   :  { %396 = vmatmul.mubr.msk.bf16.vlgmr.msra.gmra.mrb[0].mxu1 %vm180_vm3, %v164_v37 }
 0x181   :  { %400 = vmatpush3.bf16.msra.mxu1 %v422_v36  ;;  %407 = vmatprep.mubr.msk.bf16.mxu1 %vm431_vm0, %v430_v0 }
 0x182   :  { %401 = vmatprep.subr.bf16.mxu1 %v430_v0 }
 0x185   :  { %402 = vmatpush3.bf16.msra.mxu1 %v423_v38 }
 0x186   :  { %403 = vmatprep.subr.bf16.mxu1 %v430_v0 }
 0x189   :  { %404 = vmatpush3.bf16.msra.mxu1 %v424_v39 }
 0x18a   :  { %405 = vmatprep.subr.bf16.mxu1 %v430_v0 }
 0x18d   :  { %406 = vmatpush3.bf16.msra.mxu1 %v425_v40 }
 0x253   :  { %v218_v42 = vpop.f32.mrb[0].mxu1 }
 0x254   :  { %v219_v43 = vadd.f32 %v351_v41, %v218_v42  ;;  %v397_v44 = vpop.f32.mrb[1].mxu1 }
 0x255   :  { %v221_v45 = vpop.f32.mrb[2].mxu1 }
 0x256   :  { %v227_v46 = vmul.f32 0.01, %v219_v43  ;;  %v222_v47 = vadd.f32 %v351_v41, %v221_v45  ;;  %v398_v48 = vpop.f32.mrb[3].mxu1  ;;  %vm225_vm4 = vcmp.ge.f32.partialorder %v219_v43, 0.0 }
 0x258   :  { %vm226_vm5 = vcmp.ge.f32.partialorder %v222_v47, 0.0  ;;  %v228_v49 = vmul.f32 0.01, %v222_v47  ;;  %v229_v50 = vsel %vm225_vm4, %v219_v43, %v227_v46 }
 0x25a   :  { %v230_v51 = vsel %vm226_vm5, %v222_v47, %v228_v49 }
 0x25b   :  { %v231_v52 = vpack.c.bf16 %v230_v51, %v229_v50 }
 0x25d   :  { %408 = vmatmul.mubr.msk.bf16.vlgmr.msra.gmra.mrb[4].mxu1 %vm271_vm6, %v231_v52 }
 0x330   :  { %v309_v54 = vpop.f32.mrb[4].mxu1 }
 0x331   :  { %v310_v55 = vadd.f32 %v354_v53, %v309_v54  ;;  %v409_v56 = vpop.f32.mrb[5].mxu1 }
 0x332   :  { %v312_v57 = vpop.f32.mrb[6].mxu1 }
 0x333   :  { %316 = vst.msk [vmem:[%s599_s8] sm:$0xff] %vm95_vm2, %v310_v55  ;;  %v313_v58 = vadd.f32 %v354_v53, %v312_v57  ;;  %v410_v59 = vpop.f32.mrb[7].mxu1 }
 0x335   :  { %317 = vst.msk [vmem:[%s599_s8 + $0x8] sm:$0xff] %vm95_vm2, %v313_v58 }

</bundles_post_ra>
